<compile_context>
chip_gen: v7x
topology: tpu7x:2x2x1
jax: 0.10.0
libtpu: 0.0.40
codegen_flags: <defaults>
</compile_context>

<pallas_src>
import math

import numpy as np
import jax
import jax.numpy as jnp
from jax import lax
from jax.experimental import pallas as pl
from jax.experimental.pallas import tpu as pltpu


# ----------------------------------------------------------------------------
# Deterministic wavelet matrix construction (mirrors DWT_2D.get_matrix).
# Haar ('db1') reconstruction filters hardcoded (no pywt dependency).
# ----------------------------------------------------------------------------
_HAAR_REC_LO = [1.0 / math.sqrt(2.0), 1.0 / math.sqrt(2.0)]
_HAAR_REC_HI = [1.0 / math.sqrt(2.0), -1.0 / math.sqrt(2.0)]


def build_dwt_matrices(input_height, input_width,
                       band_low=_HAAR_REC_LO, band_high=_HAAR_REC_HI):
    band_length = len(band_low)
    assert band_length == len(band_high) and band_length % 2 == 0
    band_length_half = band_length // 2

    L1 = max(input_height, input_width)
    L = L1 // 2
    matrix_h = np.zeros((L, L1 + band_length - 2), dtype=np.float64)
    matrix_g = np.zeros((L1 - L, L1 + band_length - 2), dtype=np.float64)
    end = None if band_length_half == 1 else -band_length_half + 1

    index = 0
    for i in range(L):
        for j in range(band_length):
            matrix_h[i, index + j] = band_low[j]
        index += 2
    matrix_h_0 = matrix_h[0:input_height // 2, 0:input_height + band_length - 2]
    matrix_h_1 = matrix_h[0:input_width // 2, 0:input_width + band_length - 2]

    index = 0
    for i in range(L1 - L):
        for j in range(band_length):
            matrix_g[i, index + j] = band_high[j]
        index += 2
    matrix_g_0 = matrix_g[0:input_height - input_height // 2,
                          0:input_height + band_length - 2]
    matrix_g_1 = matrix_g[0:input_width - input_width // 2,
                          0:input_width + band_length - 2]

    matrix_h_0 = matrix_h_0[:, band_length_half - 1:end]
    matrix_h_1 = matrix_h_1[:, band_length_half - 1:end]
    matrix_h_1 = np.transpose(matrix_h_1)
    matrix_g_0 = matrix_g_0[:, band_length_half - 1:end]
    matrix_g_1 = matrix_g_1[:, band_length_half - 1:end]
    matrix_g_1 = np.transpose(matrix_g_1)

    return (np.asarray(matrix_h_0, np.float32),   # matrix_low_0  (H/2, H)
            np.asarray(matrix_h_1, np.float32),   # matrix_low_1  (W, W/2)
            np.asarray(matrix_g_0, np.float32),   # matrix_high_0 (H - H/2, H)
            np.asarray(matrix_g_1, np.float32))   # matrix_high_1 (W, W - W/2)


def _fused_matrices(H, W):
    """M0 = [ml0; mh0] (H, H), M1 = [ml1 | mh1] (W, W); Y = M0 @ x @ M1."""
    ml0, ml1, mh0, mh1 = build_dwt_matrices(H, W)
    m0 = np.concatenate([ml0, mh0], axis=0)   # (H, H): top rows -> L, bottom -> H
    m1 = np.concatenate([ml1, mh1], axis=1)   # (W, W): left cols -> L, right -> H
    return np.asarray(m0, np.float32), np.asarray(m1, np.float32)


def _kron_matrix(H, W):
    """(H*W, H*W) matrix K s.t. for x_flat = x.reshape(B, H*W) (row-major),
    x_flat @ K gives, per row, the quadrants concatenated as
    [vec(LL) | vec(LH) | vec(HL) | vec(HH)] (each quadrant row-major)."""
    m0, m1 = _fused_matrices(H, W)
    # Row-major vec identity: vec_r(M0 @ X @ M1) = vec_r(X) @ kron(M0^T, M1).
    K = np.kron(m0.T, m1)                     # (H*W, H*W)
    Ho, Wo = H // 2, W // 2
    perm = np.empty(H * W, dtype=np.int64)
    idx = 0
    for r0, r1, c0, c1 in ((0, Ho, 0, Wo), (0, Ho, Wo, W),
                           (Ho, H, 0, Wo), (Ho, H, Wo, W)):
        for r in range(r0, r1):
            for c in range(c0, c1):
                perm[idx] = r * W + c
                idx += 1
    return np.asarray(K[:, perm], np.float32)


# ----------------------------------------------------------------------------
# Generation-aware budgets.
# ----------------------------------------------------------------------------
def _budgets():
    """Returns (per-block byte budget for the input block, vmem_limit cap)."""
    try:
        info = pltpu.get_tpu_info()
        cap = int(getattr(info, "vmem_capacity_bytes", 0) or 0)
    except Exception:
        cap = 0
    if cap <= 0:
        cap = 64 << 20                      # conservative default (v7x per-TC VMEM)
    if cap >= (100 << 20):                  # v5e / v6e: 128 MiB VMEM
        return 6 << 20, 64 << 20
    return 3 << 20, 36 << 20                # v7x: 64 MiB VMEM per TensorCore


def _pick_tb(B, row_bytes, budget, sublane_multiple=1):
    """Largest divisor TB of B with TB % sublane_multiple == 0 (or TB == B) and
    TB*row_bytes <= budget, preferring an even grid of >= 2 steps (v7x)."""
    divisors = [d for d in range(1, B + 1) if B % d == 0]
    ok_shape = [d for d in divisors if d % sublane_multiple == 0 or d == B]
    cands = [d for d in ok_shape if d * row_bytes <= budget]
    if not cands:
        return min(ok_shape)                # best effort: smallest legal block
    tier_even = [d for d in cands if B // d >= 2 and (B // d) % 2 == 0]
    tier_two = [d for d in cands if B // d >= 2]
    for tier in (tier_even, tier_two, cands):
        if tier:
            return max(tier)
    return max(cands)


# ----------------------------------------------------------------------------
# Path 1: Kronecker-flattened kernel for small images (H*W <= 1024).
#   One lane-dense (TB, HW) @ (HW, HW) MXU matmul; quadrants are contiguous
#   column ranges of the result, stored to four separate output refs.
# ----------------------------------------------------------------------------
def _dwt2d_kron_kernel(k_ref, x_ref, ll_ref, lh_ref, hl_ref, hh_ref):
    q = ll_ref.shape[1]
    y = jnp.dot(x_ref[...], k_ref[...], preferred_element_type=jnp.float32)
    ll_ref[...] = y[:, 0 * q:1 * q].astype(ll_ref.dtype)
    lh_ref[...] = y[:, 1 * q:2 * q].astype(lh_ref.dtype)
    hl_ref[...] = y[:, 2 * q:3 * q].astype(hl_ref.dtype)
    hh_ref[...] = y[:, 3 * q:4 * q].astype(hh_ref.dtype)


def _dwt2d_kron(x, N, C, H, W, block_budget, vmem_cap):
    B = N * C
    HW = H * W
    Ho, Wo = H // 2, W // 2
    q = Ho * Wo

    kmat = jnp.asarray(_kron_matrix(H, W))
    x_flat = x.reshape(B, HW)                       # free reshape

    TB = _pick_tb(B, HW * 4, block_budget, sublane_multiple=8)
    grid = (B // TB,)

    # in block + (4 quadrant out blocks == one input block), double-buffered,
    # plus the resident (double-buffered) kron matrix, + 25% headroom.
    est = 2 * (2 * TB * HW * 4) + 2 * HW * HW * 4
    vmem_limit = int(min(vmem_cap, max(16 << 20, int(est * 1.25))))

    out_sds = jax.ShapeDtypeStruct((B, q), x.dtype)
    qspec = pl.BlockSpec((TB, q), lambda i: (i, 0))

    ll, lh, hl, hh = pl.pallas_call(
        _dwt2d_kron_kernel,
        out_shape=(out_sds, out_sds, out_sds, out_sds),
        grid_spec=pltpu.PrefetchScalarGridSpec(
            num_scalar_prefetch=0,
            grid=grid,
            in_specs=[
                pl.BlockSpec((HW, HW), lambda i: (0, 0)),   # resident transform
                pl.BlockSpec((TB, HW), lambda i: (i, 0)),   # TB flattened images
            ],
            out_specs=(qspec, qspec, qspec, qspec),
        ),
        compiler_params=pltpu.CompilerParams(
            dimension_semantics=("parallel",),
            vmem_limit_bytes=vmem_limit),
    )(kmat, x_flat)

    return (ll.reshape(N, C, Ho, Wo), lh.reshape(N, C, Ho, Wo),
            hl.reshape(N, C, Ho, Wo), hh.reshape(N, C, Ho, Wo))


# ----------------------------------------------------------------------------
# Path 2: two-stage kernel for larger images.
#   Block = (TB, H, W); fori_loop over images: Y = M0 @ x @ M1, quadrants
#   stored directly to four contiguous output arrays.
# ----------------------------------------------------------------------------
def _dwt2d_2stage_kernel(m0_ref, m1_ref, x_ref, ll_ref, lh_ref, hl_ref, hh_ref):
    TB = x_ref.shape[0]
    Ho, Wo = ll_ref.shape[1], ll_ref.shape[2]
    m0 = m0_ref[...]
    m1 = m1_ref[...]
    out_dtype = ll_ref.dtype

    def body(b, carry):
        xb = x_ref[b]                                                  # (H, W)
        zb = jnp.dot(m0, xb, preferred_element_type=jnp.float32)       # rows
        yb = jnp.dot(zb, m1, preferred_element_type=jnp.float32)       # cols
        yb = yb.astype(out_dtype)
        ll_ref[b] = yb[:Ho, :Wo]
        lh_ref[b] = yb[:Ho, Wo:]
        hl_ref[b] = yb[Ho:, :Wo]
        hh_ref[b] = yb[Ho:, Wo:]
        return carry

    lax.fori_loop(0, TB, body, 0, unroll=(TB <= 8))


def _dwt2d_2stage(x, N, C, H, W, block_budget, vmem_cap):
    B = N * C
    Ho, Wo = H // 2, W // 2
    m0_np, m1_np = _fused_matrices(H, W)
    m0 = jnp.asarray(m0_np)
    m1 = jnp.asarray(m1_np)
    x_3d = x.reshape(B, H, W)                       # free reshape

    img_bytes = H * W * 4
    TB = _pick_tb(B, img_bytes, block_budget, sublane_multiple=1)
    grid = (B // TB,)

    # double-buffered: input block + 4 quadrant out blocks (== one input block)
    # + both matrices; plus per-image live temps (+relayouts); + 25% headroom.
    est = 2 * (2 * TB * img_bytes + (H * H + W * W) * 4) + 4 * img_bytes
    vmem_limit = int(min(vmem_cap, max(16 << 20, int(est * 1.25))))

    out_sds = jax.ShapeDtypeStruct((B, Ho, Wo), x.dtype)
    qspec = pl.BlockSpec((TB, Ho, Wo), lambda i: (i, 0, 0))

    ll, lh, hl, hh = pl.pallas_call(
        _dwt2d_2stage_kernel,
        out_shape=(out_sds, out_sds, out_sds, out_sds),
        grid_spec=pltpu.PrefetchScalarGridSpec(
            num_scalar_prefetch=0,
            grid=grid,
            in_specs=[
                pl.BlockSpec((H, H), lambda i: (0, 0)),     # fused row matrix
                pl.BlockSpec((W, W), lambda i: (0, 0)),     # fused col matrix
                pl.BlockSpec((TB, H, W), lambda i: (i, 0, 0)),
            ],
            out_specs=(qspec, qspec, qspec, qspec),
        ),
        compiler_params=pltpu.CompilerParams(
            dimension_semantics=("parallel",),
            vmem_limit_bytes=vmem_limit),
    )(m0, m1, x_3d)

    return (ll.reshape(N, C, Ho, Wo), lh.reshape(N, C, Ho, Wo),
            hl.reshape(N, C, Ho, Wo), hh.reshape(N, C, Ho, Wo))


# ----------------------------------------------------------------------------
# Public entry point.
# ----------------------------------------------------------------------------
_KRON_MAX_ELEMS = 1024     # kron matrix <= 4 MiB (safe resident on all gens)


def dwt_2d_forward(x):
    """x: (N, C, H, W) -> (LL, LH, HL, HH), each (N, C, H//2, W//2)."""
    N, C, H, W = x.shape
    assert H % 2 == 0 and W % 2 == 0, "DWT_2D Pallas kernel requires even H and W"
    # TODO(synk): lane-pack multiple images along the lane axis when W < 128 in
    # the two-stage path (only matters for mid-size, narrow images).
    block_budget, vmem_cap = _budgets()
    if H * W <= _KRON_MAX_ELEMS:
        return _dwt2d_kron(x, N, C, H, W, block_budget, vmem_cap)
    return _dwt2d_2stage(x, N, C, H, W, block_budget, vmem_cap)


# ----------------------------------------------------------------------------
# Pure-JAX reference (mirrors DWTFunction_2D.forward) for correctness checks.
# ----------------------------------------------------------------------------
def dwt_2d_reference(x):
    N, C, H, W = x.shape
    ml0, ml1, mh0, mh1 = (jnp.asarray(m, jnp.float32)
                          for m in build_dwt_matrices(H, W))
    L = jnp.matmul(ml0, x)
    Hi = jnp.matmul(mh0, x)
    return (jnp.matmul(L, ml1), jnp.matmul(L, mh1),
            jnp.matmul(Hi, ml1), jnp.matmul(Hi, mh1))


if __name__ == "__main__":
    # Primary test (Kron-fused path): small images.
    N, C, H, W = 2, 4, 16, 16
    x = jax.random.normal(jax.random.PRNGKey(0), (N, C, H, W), dtype=jnp.float32)
    outs = jax.block_until_ready(dwt_2d_forward(x))
    refs = dwt_2d_reference(x)
    for o, r in zip(outs, refs):
        assert o.shape == (N, C, H // 2, W // 2)
        np.testing.assert_allclose(np.asarray(o), np.asarray(r),
                                   rtol=1e-5, atol=1e-5)

    # Secondary test (two-stage tiled path for larger images).
    N2, C2, H2, W2 = 2, 2, 64, 64
    x2 = jax.random.normal(jax.random.PRNGKey(1), (N2, C2, H2, W2),
                           dtype=jnp.float32)
    outs2 = jax.block_until_ready(dwt_2d_forward(x2))
    refs2 = dwt_2d_reference(x2)
    for o, r in zip(outs2, refs2):
        assert o.shape == (N2, C2, H2 // 2, W2 // 2)
        np.testing.assert_allclose(np.asarray(o), np.asarray(r),
                                   rtol=1e-5, atol=1e-5)

    print("KERNEL_OK")
</pallas_src>

<mosaic_0001>
module attributes {stable_mosaic.version = 11 : i64} {
  func.func @_dwt2d_kron_kernel(%arg0: i32, %arg1: memref<256x256xf32, #tpu.memory_space<vmem>>, %arg2: memref<8x256xf32, #tpu.memory_space<vmem>>, %arg3: memref<8x64xf32, #tpu.memory_space<vmem>>, %arg4: memref<8x64xf32, #tpu.memory_space<vmem>>, %arg5: memref<8x64xf32, #tpu.memory_space<vmem>>, %arg6: memref<8x64xf32, #tpu.memory_space<vmem>>) attributes {dimension_semantics = [#tpu.dimension_semantics<parallel>], iteration_bounds = array<i64: 1>, scalar_prefetch = 0 : i64, scratch_operands = 0 : i64, tpu.core_type = #tpu.core_type<tc>, window_params = [{pipeline_mode = #tpu.pipeline_mode<synchronous>, transform_indices = @transform_0, window_bounds = array<i64: 256, 256>}, {transform_indices = @transform_1, window_bounds = array<i64: 8, 256>}, {transform_indices = @transform_2, window_bounds = array<i64: 8, 64>}, {transform_indices = @transform_3, window_bounds = array<i64: 8, 64>}, {transform_indices = @transform_4, window_bounds = array<i64: 8, 64>}, {transform_indices = @transform_5, window_bounds = array<i64: 8, 64>}]} {
    %c0 = arith.constant 0 : index
    %c0_0 = arith.constant 0 : index
    %0 = vector.load %arg2[%c0, %c0_0] : memref<8x256xf32, #tpu.memory_space<vmem>>, vector<8x256xf32>
    %c0_1 = arith.constant 0 : index
    %c0_2 = arith.constant 0 : index
    %1 = vector.load %arg1[%c0_1, %c0_2] : memref<256x256xf32, #tpu.memory_space<vmem>>, vector<256x256xf32>
    %cst = arith.constant dense<0.000000e+00> : vector<8x256xf32>
    %2 = tpu.matmul %0, %1, %cst {dimension_numbers = #tpu.dot_dimension_numbers<[1], [0], [0], [1], [0, 0, 1, 1], [], []>} : vector<8x256xf32>, vector<256x256xf32>, vector<8x256xf32> -> vector<8x256xf32>
    %3 = vector.extract_strided_slice %2 {offsets = [0, 0], sizes = [8, 64], strides = [1, 1]} : vector<8x256xf32> to vector<8x64xf32>
    %c0_3 = arith.constant 0 : index
    %c0_4 = arith.constant 0 : index
    %4 = vector.load %arg3[%c0_3, %c0_4] : memref<8x64xf32, #tpu.memory_space<vmem>>, vector<8x64xf32>
    tpu.vector_store %arg3[%c0_3, %c0_4], %3 {strides = array<i32>} : memref<8x64xf32, #tpu.memory_space<vmem>>, vector<8x64xf32>,
    %5 = vector.extract_strided_slice %2 {offsets = [0, 64], sizes = [8, 64], strides = [1, 1]} : vector<8x256xf32> to vector<8x64xf32>
    %c0_5 = arith.constant 0 : index
    %c0_6 = arith.constant 0 : index
    %6 = vector.load %arg4[%c0_5, %c0_6] : memref<8x64xf32, #tpu.memory_space<vmem>>, vector<8x64xf32>
    tpu.vector_store %arg4[%c0_5, %c0_6], %5 {strides = array<i32>} : memref<8x64xf32, #tpu.memory_space<vmem>>, vector<8x64xf32>,
    %7 = vector.extract_strided_slice %2 {offsets = [0, 128], sizes = [8, 64], strides = [1, 1]} : vector<8x256xf32> to vector<8x64xf32>
    %c0_7 = arith.constant 0 : index
    %c0_8 = arith.constant 0 : index
    %8 = vector.load %arg5[%c0_7, %c0_8] : memref<8x64xf32, #tpu.memory_space<vmem>>, vector<8x64xf32>
    tpu.vector_store %arg5[%c0_7, %c0_8], %7 {strides = array<i32>} : memref<8x64xf32, #tpu.memory_space<vmem>>, vector<8x64xf32>,
    %9 = vector.extract_strided_slice %2 {offsets = [0, 192], sizes = [8, 64], strides = [1, 1]} : vector<8x256xf32> to vector<8x64xf32>
    %c0_9 = arith.constant 0 : index
    %c0_10 = arith.constant 0 : index
    %10 = vector.load %arg6[%c0_9, %c0_10] : memref<8x64xf32, #tpu.memory_space<vmem>>, vector<8x64xf32>
    tpu.vector_store %arg6[%c0_9, %c0_10], %9 {strides = array<i32>} : memref<8x64xf32, #tpu.memory_space<vmem>>, vector<8x64xf32>,
    return
  }
  func.func @transform_0(%arg0: i32) -> (i32, i32) {
    %c0_i32 = arith.constant 0 : i32
    %c0_i32_0 = arith.constant 0 : i32
    %c0_i32_1 = arith.constant 0 : i32
    return %c0_i32, %c0_i32_0 : i32, i32
  }
  func.func @transform_1(%arg0: i32) -> (i32, i32) {
    %c0_i32 = arith.constant 0 : i32
    %c0_i32_0 = arith.constant 0 : i32
    return %arg0, %c0_i32 : i32, i32
  }
  func.func @transform_2(%arg0: i32) -> (i32, i32) {
    %c0_i32 = arith.constant 0 : i32
    %c0_i32_0 = arith.constant 0 : i32
    return %arg0, %c0_i32 : i32, i32
  }
  func.func @transform_3(%arg0: i32) -> (i32, i32) {
    %c0_i32 = arith.constant 0 : i32
    %c0_i32_0 = arith.constant 0 : i32
    return %arg0, %c0_i32 : i32, i32
  }
  func.func @transform_4(%arg0: i32) -> (i32, i32) {
    %c0_i32 = arith.constant 0 : i32
    %c0_i32_0 = arith.constant 0 : i32
    return %arg0, %c0_i32 : i32, i32
  }
  func.func @transform_5(%arg0: i32) -> (i32, i32) {
    %c0_i32 = arith.constant 0 : i32
    %c0_i32_0 = arith.constant 0 : i32
    return %arg0, %c0_i32 : i32, i32
  }
}

</mosaic_0001>

<bundles_post_ra>
// kernel: tpu_custom_call.1
= control target key start
LH: loop header
LB: loop body
LE: loop exit
PB: predicated region body
PF: predicated region fallthrough
CT: control target
= control target key end

     0   :  { %11 = vsyncpa [#allocation3], 0  ;;  %s588_s0 = inlined_call_operand.hbm [shape: f32[256,256], index: 0, kind: input, shape index: {}]   ;;  %s589_s1 = inlined_call_operand.hbm [shape: f32[8,256], index: 1, kind: input, shape index: {}]   ;;  %s590_s2 = inlined_call_operand.hbm [shape: f32[8,64], index: 2, kind: output, shape index: {0}]   ;;  %s591_s3 = inlined_call_operand.hbm [shape: f32[8,64], index: 3, kind: output, shape index: {1}]   ;;  %s592_s4 = inlined_call_operand.hbm [shape: f32[8,64], index: 4, kind: output, shape index: {2}]   ;;  %s593_s5 = inlined_call_operand.hbm [shape: f32[8,64], index: 5, kind: output, shape index: {3}]  }
   0x1   :  { %12 = vsyncpa [#allocation6], 0 }
   0x2   :  { %13 = vsyncpa [#allocation4], 0 }
   0x3   :  { %14 = vsyncpa [#allocation9], 0 }
   0x4   :  { %15 = vsyncpa [#allocation12], 0  ;;  %s466_s18 = smov [#allocation2]   ;;  %s324_s22 = scalar_lea.hbm %s588_s0, 8192 }
   0x5   :  { %s21_s19 = sshll.u32 %s466_s18, 4  ;;  %p325_p0 = scmp.ne.s32.totalorder %s588_s0, %s324_s22  ;;  %s22_s19 = int_to_ptr.vmem [resolvable:$true] %s21_s19 }
   0x6   :  { %p328_p1 = scmp.lt.u32.totalorder %s324_s22, %s588_s0 }
   0x8   :  { %p330_p2 = pnand %p328_p1, %p325_p0 }
   0xa   :  { %333 = shalt.err (!%p330_p2)
}
   0xb   :  { %s334_s27 = scalar_lea.vmem %s22_s19, 8192  ;;  %p339_p4 = scmp.lt.s32.totalorder %s22_s19, %s22_s19 }
   0xc   :  { %p335_p3 = scmp.ne.s32.totalorder %s22_s19, %s334_s27  ;;  %p340_p5 = scmp.lt.s32.totalorder %s334_s27, %s334_s27 }
   0xe   :  { %p341_p6 = por %p340_p5, %p339_p4 }
  0x10   :  { %p342_p7 = pnand %p341_p6, %p335_p3 }
  0x12   :  { %345 = shalt.err (!%p342_p7)
}
  0x13   :  { %s467_s28 = smov 256   ;;  %s468_s29 = smov 16  }
  0x14   :  { %27 = dma.hbm_to_vmem [thread:$0]  %s588_s0, 8192, %s22_s19, [#allocation3], %s467_s28, %s467_s28, %s468_s29  }
  0x15   :  { %s469_s7 = smov [#allocation5]   ;;  %s346_s11 = scalar_lea.hbm %s589_s1, 256 }
  0x16   :  { %s34_s8 = sshll.u32 %s469_s7, 4  ;;  %p347_p8 = scmp.ne.s32.totalorder %s589_s1, %s346_s11  ;;  %s35_s8 = int_to_ptr.vmem [resolvable:$true] %s34_s8 }
  0x17   :  { %p350_p9 = scmp.lt.u32.totalorder %s346_s11, %s589_s1 }
  0x19   :  { %p352_p10 = pnand %p350_p9, %p347_p8 }
  0x1b   :  { %355 = shalt.err (!%p352_p10)
}
  0x1c   :  { %s356_s16 = scalar_lea.vmem %s35_s8, 256  ;;  %p361_p12 = scmp.lt.s32.totalorder %s35_s8, %s35_s8 }
  0x1d   :  { %p357_p11 = scmp.ne.s32.totalorder %s35_s8, %s356_s16  ;;  %p362_p13 = scmp.lt.s32.totalorder %s356_s16, %s356_s16 }
  0x1f   :  { %p363_p0 = por %p362_p13, %p361_p12 }
  0x21   :  { %p364_p1 = pnand %p363_p0, %p357_p11 }
  0x23   :  { %367 = shalt.err (!%p364_p1)
}
  0x24   :  { %37 = dma.hbm_to_vmem [thread:$0]  %s589_s1, 256, %s35_s8, [#allocation6]  }
  0x25   :  { %456 = dma.done.wait [#allocation3], 8192  }
  0x26   :  { %457 = vsyncadd [#allocation3], 4294959104 }
  0x27   :  { %458 = dma.done.wait [#allocation6], 256  }
  0x28   :  { %459 = vsyncadd [#allocation6], 4294967040  ;;  %v47_v0 = vld [vmem:[#allocation2 + $0x8] sm:$0xff]  ;;  %v49_v1 = vld [vmem:[#allocation2 + $0x18] sm:$0xff]  ;;  %s470_s1 = smov [#allocation7]   ;;  %vm181_vm0 = vcmask 523264  }
  0x29   :  { %v46_v2 = vld [vmem:[#allocation2] sm:$0xff]  ;;  %v251_v3 = vpack.c.bf16 %v49_v1, %v47_v0  ;;  %v48_v4 = vld [vmem:[#allocation2 + $0x10] sm:$0xff]  ;;  %v51_v5 = vld [vmem:[#allocation2 + $0x28] sm:$0xff]  ;;  %s200_s18 = sshll.u32 %s470_s1, 4  ;;  %s471_s19 = smov 64   ;;  %s201_s18 = int_to_ptr.vmem [resolvable:$true] %s200_s18 }
  0x2a   :  { %v53_v6 = vld [vmem:[#allocation2 + $0x38] sm:$0xff]  ;;  %v253_v7 = vpack.c.bf16 %v48_v4, %v46_v2  ;;  %v50_v9 = vld [vmem:[#allocation2 + $0x20] sm:$0xff]  ;;  %v52_v10 = vld [vmem:[#allocation2 + $0x30] sm:$0xff]  ;;  %s368_s20 = scalar_lea.vmem %s201_s18, 128  ;;  %p373_p3 = scmp.lt.s32.totalorder %s201_s18, %s201_s18 }
  0x2b   :  { %v255_v8 = vpack.c.bf16 %v53_v6, %v51_v5  ;;  %v55_v11 = vld [vmem:[#allocation2 + $0x48] sm:$0xff]  ;;  %252 = vmatprep.subr.bf16.mxu0 %v251_v3  ;;  %v57_v12 = vld [vmem:[#allocation2 + $0x58] sm:$0xff]  ;;  %v257_v13 = vpack.c.bf16 %v52_v10, %v50_v9  ;;  %v54_v15 = vld [vmem:[#allocation2 + $0x40] sm:$0xff]  ;;  %p369_p2 = scmp.ne.s32.totalorder %s201_s18, %s368_s20  ;;  %p374_p4 = scmp.lt.s32.totalorder %s368_s20, %s368_s20 }
  0x2c   :  { %254 = vmatpush1.bf16.msra.mxu0 %v253_v7  ;;  %v259_v14 = vpack.c.bf16 %v57_v12, %v55_v11  ;;  %v56_v16 = vld [vmem:[#allocation2 + $0x50] sm:$0xff]  ;;  %v59_v17 = vld [vmem:[#allocation2 + $0x68] sm:$0xff]  ;;  %v61_v18 = vld [vmem:[#allocation2 + $0x78] sm:$0xff] }
  0x2d   :  { %256 = vmatprep.subr.bf16.mxu0 %v255_v8  ;;  %v261_v19 = vpack.c.bf16 %v56_v16, %v54_v15  ;;  %v263_v20 = vpack.c.bf16 %v61_v18, %v59_v17  ;;  %v58_v21 = vld [vmem:[#allocation2 + $0x60] sm:$0xff]  ;;  %v60_v22 = vld [vmem:[#allocation2 + $0x70] sm:$0xff]  ;;  %v63_v23 = vld [vmem:[#allocation2 + $0x88] sm:$0xff]  ;;  %p375_p5 = por %p374_p4, %p373_p3 }
  0x2e   :  { %v65_v24 = vld [vmem:[#allocation2 + $0x98] sm:$0xff]  ;;  %v265_v25 = vpack.c.bf16 %v60_v22, %v58_v21  ;;  %v62_v27 = vld [vmem:[#allocation2 + $0x80] sm:$0xff]  ;;  %v64_v28 = vld [vmem:[#allocation2 + $0x90] sm:$0xff] }
  0x2f   :  { %v267_v26 = vpack.c.bf16 %v65_v24, %v63_v23  ;;  %v67_v29 = vld [vmem:[#allocation2 + $0xa8] sm:$0xff]  ;;  %v69_v30 = vld [vmem:[#allocation2 + $0xb8] sm:$0xff]  ;;  %v269_v31 = vpack.c.bf16 %v64_v28, %v62_v27  ;;  %v66_v33 = vld [vmem:[#allocation2 + $0xa0] sm:$0xff]  ;;  %p376_p6 = pnand %p375_p5, %p369_p2 }
  0x30   :  { %258 = vmatpush1.bf16.msra.mxu0 %v257_v13  ;;  %v271_v32 = vpack.c.bf16 %v69_v30, %v67_v29  ;;  %v68_v34 = vld [vmem:[#allocation2 + $0xb0] sm:$0xff]  ;;  %v71_v35 = vld [vmem:[#allocation2 + $0xc8] sm:$0xff]  ;;  %v73_v36 = vld [vmem:[#allocation2 + $0xd8] sm:$0xff] }
  0x31   :  { %260 = vmatprep.subr.bf16.mxu0 %v259_v14  ;;  %v273_v37 = vpack.c.bf16 %v68_v34, %v66_v33  ;;  %v275_v38 = vpack.c.bf16 %v73_v36, %v71_v35  ;;  %v70_v39 = vld [vmem:[#allocation2 + $0xc0] sm:$0xff]  ;;  %v72_v40 = vld [vmem:[#allocation2 + $0xd0] sm:$0xff]  ;;  %v45_v41 = vld [vmem:[#allocation5 + $0x8] sm:$0xff] }
  0x32   :  { %v75_v42 = vld [vmem:[#allocation2 + $0xe8] sm:$0xff]  ;;  %v77_v43 = vld [vmem:[#allocation2 + $0xf8] sm:$0xff]  ;;  %174 = vmatprep.mubr.f32.mxu0 %v45_v41  ;;  %v277_v44 = vpack.c.bf16 %v72_v40, %v70_v39  ;;  %v74_v46 = vld [vmem:[#allocation2 + $0xe0] sm:$0xff] }
  0x33   :  { %v279_v45 = vpack.c.bf16 %v77_v43, %v75_v42  ;;  %v76_v47 = vld [vmem:[#allocation2 + $0xf0] sm:$0xff]  ;;  %v79_v48 = vld [vmem:[#allocation2 + $0x108] sm:$0xff]  ;;  %v81_v49 = vld [vmem:[#allocation2 + $0x118] sm:$0xff] }
  0x34   :  { %262 = vmatpush1.bf16.msra.mxu0 %v261_v19  ;;  %v281_v50 = vpack.c.bf16 %v76_v47, %v74_v46  ;;  %v283_v51 = vpack.c.bf16 %v81_v49, %v79_v48  ;;  %v78_v52 = vld [vmem:[#allocation2 + $0x100] sm:$0xff]  ;;  %v80_v53 = vld [vmem:[#allocation2 + $0x110] sm:$0xff]  ;;  %v83_v54 = vld [vmem:[#allocation2 + $0x128] sm:$0xff] }
  0x35   :  { %264 = vmatprep.subr.bf16.mxu0 %v263_v20  ;;  %v85_v55 = vld [vmem:[#allocation2 + $0x138] sm:$0xff]  ;;  %v285_v56 = vpack.c.bf16 %v80_v53, %v78_v52  ;;  %v82_v58 = vld [vmem:[#allocation2 + $0x120] sm:$0xff]  ;;  %v84_v59 = vld [vmem:[#allocation2 + $0x130] sm:$0xff] }
  0x36   :  { %v287_v57 = vpack.c.bf16 %v85_v55, %v83_v54  ;;  %v87_v60 = vld [vmem:[#allocation2 + $0x148] sm:$0xff]  ;;  %v89_v61 = vld [vmem:[#allocation2 + $0x158] sm:$0xff]  ;;  %v289_v62 = vpack.c.bf16 %v84_v59, %v82_v58  ;;  %v86_v0 = vld [vmem:[#allocation2 + $0x140] sm:$0xff] }
  0x37   :  { %v291_v63 = vpack.c.bf16 %v89_v61, %v87_v60  ;;  %v88_v1 = vld [vmem:[#allocation2 + $0x150] sm:$0xff]  ;;  %v91_v2 = vld [vmem:[#allocation2 + $0x168] sm:$0xff]  ;;  %v93_v3 = vld [vmem:[#allocation2 + $0x178] sm:$0xff] }
  0x38   :  { %266 = vmatpush1.bf16.msra.mxu0 %v265_v25  ;;  %v293_v4 = vpack.c.bf16 %v88_v1, %v86_v0  ;;  %v295_v5 = vpack.c.bf16 %v93_v3, %v91_v2  ;;  %v90_v6 = vld [vmem:[#allocation2 + $0x160] sm:$0xff]  ;;  %v92_v7 = vld [vmem:[#allocation2 + $0x170] sm:$0xff]  ;;  %v95_v8 = vld [vmem:[#allocation2 + $0x188] sm:$0xff] }
  0x39   :  { %268 = vmatprep.subr.bf16.mxu0 %v267_v26  ;;  %v97_v9 = vld [vmem:[#allocation2 + $0x198] sm:$0xff]  ;;  %v297_v10 = vpack.c.bf16 %v92_v7, %v90_v6  ;;  %v94_v12 = vld [vmem:[#allocation2 + $0x180] sm:$0xff]  ;;  %v96_v13 = vld [vmem:[#allocation2 + $0x190] sm:$0xff] }
  0x3a   :  { %v299_v11 = vpack.c.bf16 %v97_v9, %v95_v8  ;;  %v99_v14 = vld [vmem:[#allocation2 + $0x1a8] sm:$0xff]  ;;  %v101_v15 = vld [vmem:[#allocation2 + $0x1b8] sm:$0xff]  ;;  %v301_v16 = vpack.c.bf16 %v96_v13, %v94_v12  ;;  %v98_v18 = vld [vmem:[#allocation2 + $0x1a0] sm:$0xff] }
  0x3b   :  { %v303_v17 = vpack.c.bf16 %v101_v15, %v99_v14  ;;  %v100_v19 = vld [vmem:[#allocation2 + $0x1b0] sm:$0xff]  ;;  %v103_v20 = vld [vmem:[#allocation2 + $0x1c8] sm:$0xff]  ;;  %v105_v21 = vld [vmem:[#allocation2 + $0x1d8] sm:$0xff] }
  0x3c   :  { %270 = vmatpush1.bf16.msra.mxu0 %v269_v31  ;;  %v305_v22 = vpack.c.bf16 %v100_v19, %v98_v18  ;;  %v307_v23 = vpack.c.bf16 %v105_v21, %v103_v20  ;;  %v102_v24 = vld [vmem:[#allocation2 + $0x1c0] sm:$0xff]  ;;  %v104_v25 = vld [vmem:[#allocation2 + $0x1d0] sm:$0xff]  ;;  %v107_v26 = vld [vmem:[#allocation2 + $0x1e8] sm:$0xff] }
  0x3d   :  { %272 = vmatprep.subr.bf16.mxu0 %v271_v32  ;;  %v109_v27 = vld [vmem:[#allocation2 + $0x1f8] sm:$0xff]  ;;  %v309_v28 = vpack.c.bf16 %v104_v25, %v102_v24  ;;  %v106_v30 = vld [vmem:[#allocation2 + $0x1e0] sm:$0xff]  ;;  %v108_v31 = vld [vmem:[#allocation2 + $0x1f0] sm:$0xff] }
  0x3e   :  { %v311_v29 = vpack.c.bf16 %v109_v27, %v107_v26  ;;  %v313_v32 = vpack.c.bf16 %v108_v31, %v106_v30  ;;  %v44_v33 = vld [vmem:[#allocation5] sm:$0xff] }
  0x40   :  { %274 = vmatpush1.bf16.msra.mxu0 %v273_v37 }
  0x41   :  { %276 = vmatprep.subr.bf16.mxu0 %v275_v38 }
  0x44   :  { %278 = vmatpush1.bf16.msra.mxu0 %v277_v44 }
  0x45   :  { %280 = vmatprep.subr.bf16.mxu0 %v279_v45 }
  0x48   :  { %282 = vmatpush1.bf16.msra.mxu0 %v281_v50 }
  0x49   :  { %284 = vmatprep.subr.bf16.mxu0 %v283_v51 }
  0x4c   :  { %286 = vmatpush1.bf16.msra.mxu0 %v285_v56 }
  0x4d   :  { %288 = vmatprep.subr.bf16.mxu0 %v287_v57 }
  0x50   :  { %290 = vmatpush1.bf16.msra.mxu0 %v289_v62 }
  0x51   :  { %292 = vmatprep.subr.bf16.mxu0 %v291_v63 }
  0x54   :  { %294 = vmatpush1.bf16.msra.mxu0 %v293_v4 }
  0x55   :  { %296 = vmatprep.subr.bf16.mxu0 %v295_v5 }
  0x58   :  { %298 = vmatpush1.bf16.msra.mxu0 %v297_v10 }
  0x59   :  { %300 = vmatprep.subr.bf16.mxu0 %v299_v11 }
  0x5c   :  { %302 = vmatpush1.bf16.msra.mxu0 %v301_v16 }
  0x5d   :  { %304 = vmatprep.subr.bf16.mxu0 %v303_v17 }
  0x60   :  { %306 = vmatpush1.bf16.msra.mxu0 %v305_v22 }
  0x61   :  { %308 = vmatprep.subr.bf16.mxu0 %v307_v23 }
  0x64   :  { %310 = vmatpush1.bf16.msra.mxu0 %v309_v28 }
  0x65   :  { %312 = vmatprep.subr.bf16.mxu0 %v311_v29 }
  0x68   :  { %314 = vmatpush1.bf16.msra.mxu0 %v313_v32 }
  0x6b   :  { %175 = vmatmul.mubr.f32.vlgmr.msra.gmra.mrb[0].mxu0 %v44_v33 }
 0x13e   :  { %v176_v34 = vpop.f32.mrb[0].mxu0 }
 0x13f   :  { %184 = vrot.lane.b32.xlu0 %v176_v34, %s471_s19  ;;  %v178_v35 = vpop.f32.mrb[1].mxu0  ;;  %182 = vst.msk [vmem:[#allocation7] sm:$0xff] %vm181_vm0, %v176_v34 }
 0x140   :  { %188 = vst.msk [vmem:[#allocation10] sm:$0xff] %vm181_vm0, %v178_v35 }
 0x141   :  { %379 = shalt.err (!%p376_p6)
}
 0x142   :  { %s380_s23 = scalar_lea.hbm %s590_s2, 128 }
 0x143   :  { %p381_p7 = scmp.ne.s32.totalorder %s590_s2, %s380_s23  ;;  %p384_p8 = scmp.lt.u32.totalorder %s380_s23, %s590_s2 }
 0x145   :  { %p386_p9 = pnand %p384_p8, %p381_p7 }
 0x147   :  { %389 = shalt.err (!%p386_p9)
}
 0x148   :  { %203 = dma.vmem_to_hbm [thread:$0]  %s201_s18, 128, %s590_s2, [#allocation4]   ;;  %190 = vrot.lane.b32.xlu0 %v178_v35, %s471_s19 }
 0x149   :  { %s472_s30 = smov [#allocation8]   ;;  %s473_s7 = smov [#allocation10]  }
 0x14a   :  { %s210_s6 = sshll.u32 %s472_s30, 4  ;;  %s220_s8 = sshll.u32 %s473_s7, 4  ;;  %s211_s6 = int_to_ptr.vmem [resolvable:$true] %s210_s6  ;;  %s221_s8 = int_to_ptr.vmem [resolvable:$true] %s220_s8 }
 0x14b   :  { %s474_s9 = smov [#allocation11]   ;;  %s390_s11 = scalar_lea.vmem %s211_s6, 128 }
 0x14c   :  { %s230_s10 = sshll.u32 %s474_s9, 4  ;;  %p391_p10 = scmp.ne.s32.totalorder %s211_s6, %s390_s11  ;;  %s544_s10 = int_to_ptr.vmem [resolvable:$true] %s230_s10 }
 0x14d   :  { %p395_p11 = scmp.lt.s32.totalorder %s211_s6, %s211_s6  ;;  %p396_p12 = scmp.lt.s32.totalorder %s390_s11, %s390_s11 }
 0x14f   :  { %p397_p13 = por %p396_p12, %p395_p11 }
 0x151   :  { %p398_p0 = pnand %p397_p13, %p391_p10 }
 0x1b1   :  { %v185_v36 = vpop.permute.xlu0 %184 }
 0x1b2   :  { %187 = vst.msk [vmem:[#allocation8] sm:$0xff] %vm181_vm0, %v185_v36 }
 0x1b3   :  { %401 = shalt.err (!%p398_p0)
}
 0x1b4   :  { %s402_s13 = scalar_lea.hbm %s591_s3, 128 }
 0x1b5   :  { %p403_p1 = scmp.ne.s32.totalorder %s591_s3, %s402_s13  ;;  %p406_p2 = scmp.lt.u32.totalorder %s402_s13, %s591_s3 }
 0x1b7   :  { %p408_p3 = pnand %p406_p2, %p403_p1 }
 0x1b9   :  { %411 = shalt.err (!%p408_p3)
}
 0x1ba   :  { %213 = dma.vmem_to_hbm [thread:$0]  %s211_s6, 128, %s591_s3, [#allocation9]  }
 0x1bb   :  { %s412_s18 = scalar_lea.vmem %s221_s8, 128  ;;  %p417_p5 = scmp.lt.s32.totalorder %s221_s8, %s221_s8 }
 0x1bc   :  { %p413_p4 = scmp.ne.s32.totalorder %s221_s8, %s412_s18  ;;  %p418_p6 = scmp.lt.s32.totalorder %s412_s18, %s412_s18 }
 0x1be   :  { %p419_p7 = por %p418_p6, %p417_p5 }
 0x1c0   :  { %p420_p8 = pnand %p419_p7, %p413_p4 }
 0x1c2   :  { %423 = shalt.err (!%p420_p8)
}
 0x1c3   :  { %s424_s21 = scalar_lea.hbm %s592_s4, 128 }
 0x1c4   :  { %p425_p9 = scmp.ne.s32.totalorder %s592_s4, %s424_s21  ;;  %p428_p10 = scmp.lt.u32.totalorder %s424_s21, %s592_s4 }
 0x1c6   :  { %p430_p11 = pnand %p428_p10, %p425_p9 }
 0x1c8   :  { %433 = shalt.err (!%p430_p11)
}
 0x1c9   :  { %223 = dma.vmem_to_hbm [thread:$0]  %s221_s8, 128, %s592_s4, [#allocation9]   ;;  %v191_v37 = vpop.permute.xlu0 %190 }
 0x1ca   :  { %193 = vst.msk [vmem:[#allocation11] sm:$0xff] %vm181_vm0, %v191_v37  ;;  %s434_s27 = scalar_lea.vmem %s544_s10, 128  ;;  %p439_p13 = scmp.lt.s32.totalorder %s544_s10, %s544_s10 }
 0x1cb   :  { %p435_p12 = scmp.ne.s32.totalorder %s544_s10, %s434_s27  ;;  %p440_p0 = scmp.lt.s32.totalorder %s434_s27, %s434_s27 }
 0x1cd   :  { %p441_p1 = por %p440_p0, %p439_p13 }
 0x1cf   :  { %p442_p2 = pnand %p441_p1, %p435_p12 }
 0x1d1   :  { %445 = shalt.err (!%p442_p2)
}
 0x1d2   :  { %s446_s30 = scalar_lea.hbm %s593_s5, 128 }
 0x1d3   :  { %p447_p3 = scmp.ne.s32.totalorder %s593_s5, %s446_s30  ;;  %p450_p4 = scmp.lt.u32.totalorder %s446_s30, %s593_s5 }
 0x1d5   :  { %p452_p5 = pnand %p450_p4, %p447_p3 }
 0x1d7   :  { %455 = shalt.err (!%p452_p5)
}
 0x1d8   :  { %233 = dma.vmem_to_hbm [thread:$0]  %s544_s10, 128, %s593_s5, [#allocation12]  }
 0x1d9   :  { %460 = dma.done.wait [#allocation4], 128  }
 0x1da   :  { %461 = vsyncadd [#allocation4], 4294967168 }
 0x1db   :  { %462 = dma.done.wait [#allocation9], 256  }
 0x1dc   :  { %463 = vsyncadd [#allocation9], 4294967040 }
 0x1dd   :  { %464 = dma.done.wait [#allocation12], 128  }
 0x1de   :  { %465 = vsyncadd [#allocation12], 4294967168 }
 0x1df   :  { %246 = vsyncpa [#allocation3], 1 }
 0x1e0   :  { %247 = vsyncpa [#allocation6], 1 }
 0x1e1   :  { %248 = vsyncpa [#allocation4], 1 }
 0x1e2   :  { %249 = vsyncpa [#allocation9], 1 }
 0x1e3   :  { %250 = vsyncpa [#allocation12], 1 }

</bundles_post_ra>
